<compile_context>
chip_gen: v7x
topology: tpu7x:2x2x1
jax: 0.10.0
libtpu: 0.0.40
codegen_flags: <defaults>
</compile_context>

<pallas_src>
import jax
import jax.numpy as jnp
from jax.experimental import pallas as pl
from jax.experimental.pallas import tpu as pltpu


def _turbo_subnet_kernel(w1_ref, w2_ref, w3_ref, ext_ref, sys_ref, int_ref, o_ref):
    # Pure VPU elementwise tile: x = w1*L_ext - w2*L_sys - w3*L_int.
    # Weight tiles are (1, tile_n) and broadcast over the tile_m rows.
    o_ref[...] = (w1_ref[...] * ext_ref[...]
                  - w2_ref[...] * sys_ref[...]
                  - w3_ref[...] * int_ref[...])


def _round_up(x, m):
    return ((x + m - 1) // m) * m


def turbo_subnet_forward(w1, w2, w3, L_ext, L_sys, L_int,
                         *,
                         per_array_tile_bytes=4 << 20,   # 4 MiB/array/step
                         vmem_limit_bytes=48 << 20,
                         small_problem_bytes=1 << 20,
                         force_pallas=False):
    """Pallas implementation of Turbo_subnet.forward.

    w1, w2, w3: (1, block_len) float32
    L_ext, L_sys, L_int: (batch, block_len) float32
    returns: (batch, block_len) float32
    """
    batch, block_len = L_ext.shape
    assert L_sys.shape == (batch, block_len)
    assert L_int.shape == (batch, block_len)
    assert w1.shape == (1, block_len)
    assert w2.shape == (1, block_len)
    assert w3.shape == (1, block_len)

    dtype = L_ext.dtype
    itemsize = jnp.dtype(dtype).itemsize
    total_stream_bytes = 4 * batch * block_len * itemsize   # 3 inputs + 1 output

    # --- small-problem fast path: launch + pipeline prologue dominate below
    # ~1 MiB of streamed bytes; XLA's fused elementwise is strictly faster.
    if not force_pallas and total_stream_bytes < small_problem_bytes:
        return w1 * L_ext - w2 * L_sys - w3 * L_int

    # ------------------------------------------------------------------
    # Tile selection.  Block-shape rule: each of the last two dims must be a
    # multiple of (8, 128) OR equal the full array dim, so no padding is ever
    # needed -- ragged last blocks are bounds-clipped by Pallas.
    # ------------------------------------------------------------------
    # Last dim: prefer the full width (lane-dense stores, weights resident).
    # Only if a single 8-row full-width slab would blow the per-array budget
    # do we fall back to 128-aligned column stripes.
    if block_len * itemsize * 8 <= per_array_tile_bytes:
        tile_n = block_len
    else:
        tile_n = max(128, ((per_array_tile_bytes // (8 * itemsize)) // 128) * 128)
    grid_n = pl.cdiv(block_len, tile_n)

    # Row dim: biggest multiple-of-8 row block that keeps one tile within the
    # per-array budget.
    max_tile_m = max(8, ((per_array_tile_bytes // (tile_n * itemsize)) // 8) * 8)
    if batch <= max_tile_m:
        if total_stream_bytes >= (4 << 20) and batch >= 16:
            # Problem is big enough to matter: split rows into >= 2 blocks so
            # v7x's two TensorCores both get work (no-op on v5e/v6e).
            tile_m = max(8, _round_up(-(-batch // 2), 8))
        else:
            tile_m = batch            # full dim -> always a legal block shape
    else:
        tile_m = max_tile_m           # multiple of 8; grid_m >= 2 automatically
    grid_m = pl.cdiv(batch, tile_m)

    # Column axis OUTERMOST: within a column stripe the weight block index is
    # constant, so each weight element is DMA'd exactly once (and in the common
    # grid_n == 1 case the weights are simply VMEM-resident for the whole run).
    grid = (grid_n, grid_m)
    w_spec = pl.BlockSpec((1, tile_n), lambda j, i: (0, j))
    x_spec = pl.BlockSpec((tile_m, tile_n), lambda j, i: (i, j))

    cost = pl.CostEstimate(
        flops=5 * batch * block_len,                       # 3 mul + 2 sub / elem
        transcendentals=0,
        bytes_accessed=total_stream_bytes + 3 * block_len * itemsize,
    )

    return pl.pallas_call(
        _turbo_subnet_kernel,
        out_shape=jax.ShapeDtypeStruct((batch, block_len), dtype),
        grid_spec=pltpu.PrefetchScalarGridSpec(
            num_scalar_prefetch=0,
            grid=grid,
            in_specs=[w_spec, w_spec, w_spec, x_spec, x_spec, x_spec],
            out_specs=x_spec,
        ),
        compiler_params=pltpu.CompilerParams(
            dimension_semantics=("parallel", "parallel"),
            vmem_limit_bytes=vmem_limit_bytes,
        ),
        cost_estimate=cost,
    )(w1, w2, w3, L_ext, L_sys, L_int)


if __name__ == "__main__":
    key = jax.random.PRNGKey(0)
    k1, k2, k3, k4, k5, k6, k7, k8, k9 = jax.random.split(key, 9)

    # --- primary demo: the module's natural small shape (forced through the
    # kernel so the Pallas path is exercised) ---
    batch, block_len = 2, 16
    L_ext = jax.random.normal(k1, (batch, block_len), dtype=jnp.float32)
    L_sys = jax.random.normal(k2, (batch, block_len), dtype=jnp.float32)
    L_int = jax.random.normal(k3, (batch, block_len), dtype=jnp.float32)

    # Deterministic parameter init: init_type='ones' from the PyTorch module.
    w1 = jnp.ones((1, block_len), dtype=jnp.float32)
    w2 = jnp.ones((1, block_len), dtype=jnp.float32)
    w3 = jnp.ones((1, block_len), dtype=jnp.float32)

    ref = w1 * L_ext - w2 * L_sys - w3 * L_int

    out = turbo_subnet_forward(w1, w2, w3, L_ext, L_sys, L_int, force_pallas=True)
    out = jax.block_until_ready(out)
    assert out.shape == (batch, block_len)
    assert jnp.allclose(out, ref, atol=1e-6), "mismatch vs reference (kernel, small)"

    # Small-problem fast path (same shape, not forced) must agree too.
    out_fast = jax.block_until_ready(
        turbo_subnet_forward(w1, w2, w3, L_ext, L_sys, L_int))
    assert jnp.allclose(out_fast, ref, atol=1e-6), "mismatch vs reference (fast path)"

    # --- secondary check: unaligned shape (no padding path anymore), row-block
    # grid, weight broadcasting ---
    b2, n2 = 40, 1000
    L_ext2 = jax.random.normal(k4, (b2, n2), dtype=jnp.float32)
    L_sys2 = jax.random.normal(k5, (b2, n2), dtype=jnp.float32)
    L_int2 = jax.random.normal(k6, (b2, n2), dtype=jnp.float32)
    w1b = jax.random.uniform(k7, (1, n2), dtype=jnp.float32)
    w2b = jax.random.uniform(k8, (1, n2), dtype=jnp.float32)
    w3b = jax.random.uniform(k9, (1, n2), dtype=jnp.float32)

    out2 = turbo_subnet_forward(w1b, w2b, w3b, L_ext2, L_sys2, L_int2,
                                force_pallas=True)
    out2 = jax.block_until_ready(out2)
    ref2 = w1b * L_ext2 - w2b * L_sys2 - w3b * L_int2
    assert out2.shape == (b2, n2)
    assert jnp.allclose(out2, ref2, atol=1e-5), "mismatch vs reference (unaligned)"

    print("KERNEL_OK")
</pallas_src>

<mosaic_0001>
module attributes {stable_mosaic.version = 11 : i64} {
  func.func @_turbo_subnet_kernel(%arg0: i32, %arg1: i32, %arg2: memref<1x16xf32, #tpu.memory_space<vmem>>, %arg3: memref<1x16xf32, #tpu.memory_space<vmem>>, %arg4: memref<1x16xf32, #tpu.memory_space<vmem>>, %arg5: memref<2x16xf32, #tpu.memory_space<vmem>>, %arg6: memref<2x16xf32, #tpu.memory_space<vmem>>, %arg7: memref<2x16xf32, #tpu.memory_space<vmem>>, %arg8: memref<2x16xf32, #tpu.memory_space<vmem>>) attributes {dimension_semantics = [#tpu.dimension_semantics<parallel>, #tpu.dimension_semantics<parallel>], iteration_bounds = array<i64: 1, 1>, scalar_prefetch = 0 : i64, scratch_operands = 0 : i64, tpu.core_type = #tpu.core_type<tc>, window_params = [{transform_indices = @transform_0, window_bounds = array<i64: 1, 16>}, {transform_indices = @transform_1, window_bounds = array<i64: 1, 16>}, {transform_indices = @transform_2, window_bounds = array<i64: 1, 16>}, {transform_indices = @transform_3, window_bounds = array<i64: 2, 16>}, {transform_indices = @transform_4, window_bounds = array<i64: 2, 16>}, {transform_indices = @transform_5, window_bounds = array<i64: 2, 16>}, {transform_indices = @transform_6, window_bounds = array<i64: 2, 16>}]} {
    %c0 = arith.constant 0 : index
    %c0_0 = arith.constant 0 : index
    %0 = vector.load %arg2[%c0, %c0_0] : memref<1x16xf32, #tpu.memory_space<vmem>>, vector<1x16xf32>
    %c0_1 = arith.constant 0 : index
    %c0_2 = arith.constant 0 : index
    %1 = vector.load %arg5[%c0_1, %c0_2] : memref<2x16xf32, #tpu.memory_space<vmem>>, vector<2x16xf32>
    %2 = vector.broadcast %0 : vector<1x16xf32> to vector<2x16xf32>
    %3 = arith.mulf %2, %1 : vector<2x16xf32>
    %c0_3 = arith.constant 0 : index
    %c0_4 = arith.constant 0 : index
    %4 = vector.load %arg3[%c0_3, %c0_4] : memref<1x16xf32, #tpu.memory_space<vmem>>, vector<1x16xf32>
    %c0_5 = arith.constant 0 : index
    %c0_6 = arith.constant 0 : index
    %5 = vector.load %arg6[%c0_5, %c0_6] : memref<2x16xf32, #tpu.memory_space<vmem>>, vector<2x16xf32>
    %6 = vector.broadcast %4 : vector<1x16xf32> to vector<2x16xf32>
    %7 = arith.mulf %6, %5 : vector<2x16xf32>
    %8 = arith.subf %3, %7 : vector<2x16xf32>
    %c0_7 = arith.constant 0 : index
    %c0_8 = arith.constant 0 : index
    %9 = vector.load %arg4[%c0_7, %c0_8] : memref<1x16xf32, #tpu.memory_space<vmem>>, vector<1x16xf32>
    %c0_9 = arith.constant 0 : index
    %c0_10 = arith.constant 0 : index
    %10 = vector.load %arg7[%c0_9, %c0_10] : memref<2x16xf32, #tpu.memory_space<vmem>>, vector<2x16xf32>
    %11 = vector.broadcast %9 : vector<1x16xf32> to vector<2x16xf32>
    %12 = arith.mulf %11, %10 : vector<2x16xf32>
    %13 = arith.subf %8, %12 : vector<2x16xf32>
    %c0_11 = arith.constant 0 : index
    %c0_12 = arith.constant 0 : index
    %14 = vector.load %arg8[%c0_11, %c0_12] : memref<2x16xf32, #tpu.memory_space<vmem>>, vector<2x16xf32>
    tpu.vector_store %arg8[%c0_11, %c0_12], %13 {strides = array<i32>} : memref<2x16xf32, #tpu.memory_space<vmem>>, vector<2x16xf32>,
    return
  }
  func.func @transform_0(%arg0: i32, %arg1: i32) -> (i32, i32) {
    %c0_i32 = arith.constant 0 : i32
    %c0_i32_0 = arith.constant 0 : i32
    return %c0_i32, %arg0 : i32, i32
  }
  func.func @transform_1(%arg0: i32, %arg1: i32) -> (i32, i32) {
    %c0_i32 = arith.constant 0 : i32
    %c0_i32_0 = arith.constant 0 : i32
    return %c0_i32, %arg0 : i32, i32
  }
  func.func @transform_2(%arg0: i32, %arg1: i32) -> (i32, i32) {
    %c0_i32 = arith.constant 0 : i32
    %c0_i32_0 = arith.constant 0 : i32
    return %c0_i32, %arg0 : i32, i32
  }
  func.func @transform_3(%arg0: i32, %arg1: i32) -> (i32, i32) {
    %c0_i32 = arith.constant 0 : i32
    return %arg1, %arg0 : i32, i32
  }
  func.func @transform_4(%arg0: i32, %arg1: i32) -> (i32, i32) {
    %c0_i32 = arith.constant 0 : i32
    return %arg1, %arg0 : i32, i32
  }
  func.func @transform_5(%arg0: i32, %arg1: i32) -> (i32, i32) {
    %c0_i32 = arith.constant 0 : i32
    return %arg1, %arg0 : i32, i32
  }
  func.func @transform_6(%arg0: i32, %arg1: i32) -> (i32, i32) {
    %c0_i32 = arith.constant 0 : i32
    return %arg1, %arg0 : i32, i32
  }
}

</mosaic_0001>

<bundles_post_ra>
// kernel: tpu_custom_call.1
= control target key start
LH: loop header
LB: loop body
LE: loop exit
PB: predicated region body
PF: predicated region fallthrough
CT: control target
= control target key end

     0   :  { %11 = vsyncpa [#allocation3], 0  ;;  %s259_s0 = inlined_call_operand.hbm [shape: f32[1,16], index: 0, kind: input, shape index: {}]   ;;  %s260_s1 = inlined_call_operand.vmem [shape: f32[1,16], index: 1, kind: input, shape index: {}]   ;;  %s261_s2 = inlined_call_operand.hbm [shape: f32[1,16], index: 2, kind: input, shape index: {}]   ;;  %s262_s3 = inlined_call_operand.vmem [shape: f32[2,16], index: 3, kind: input, shape index: {}]   ;;  %s263_s4 = inlined_call_operand.vmem [shape: f32[2,16], index: 4, kind: input, shape index: {}]   ;;  %s264_s5 = inlined_call_operand.vmem [shape: f32[2,16], index: 5, kind: input, shape index: {}]   ;;  %s265_s6 = inlined_call_operand.hbm [shape: f32[2,16], index: 6, kind: output, shape index: {}]  }
   0x1   :  { %12 = vsyncpa [#allocation6], 0 }
   0x2   :  { %13 = vsyncpa [#allocation4], 0  ;;  %s173_s21 = smov [#allocation2]   ;;  %s174_s23 = smov [#allocation5]  }
   0x3   :  { %s20_s22 = sshll.u32 %s173_s21, 4  ;;  %s32_s24 = sshll.u32 %s174_s23, 4  ;;  %s21_s22 = int_to_ptr.vmem [resolvable:$true] %s20_s22  ;;  %s33_s24 = int_to_ptr.vmem [resolvable:$true] %s32_s24 }
   0x4   :  { %s101_s27 = scalar_lea.hbm %s259_s0, 16 }
   0x5   :  { %p102_p0 = scmp.ne.s32.totalorder %s259_s0, %s101_s27  ;;  %p105_p1 = scmp.lt.u32.totalorder %s101_s27, %s259_s0 }
   0x7   :  { %p107_p2 = pnand %p105_p1, %p102_p0 }
   0x9   :  { %110 = shalt.err (!%p107_p2)
}
   0xa   :  { %s111_s8 = scalar_lea.vmem %s21_s22, 16  ;;  %s115_s9 = scalar_lea.vmem %s21_s22, 32 }
   0xb   :  { %p112_p3 = scmp.ne.s32.totalorder %s21_s22, %s111_s8  ;;  %p116_p4 = scmp.lt.s32.totalorder %s21_s22, %s21_s22 }
   0xc   :  { %p117_p5 = scmp.lt.s32.totalorder %s115_s9, %s111_s8 }
   0xe   :  { %p118_p6 = por %p117_p5, %p116_p4 }
  0x10   :  { %p119_p7 = pnand %p118_p6, %p112_p3 }
  0x12   :  { %122 = shalt.err (!%p119_p7)
}
  0x13   :  { %23 = dma.hbm_to_vmem [thread:$0]  %s259_s0, 16, %s21_s22, [#allocation3]  }
  0x14   :  { %s123_s14 = scalar_lea.hbm %s261_s2, 16 }
  0x15   :  { %p124_p8 = scmp.ne.s32.totalorder %s261_s2, %s123_s14  ;;  %p127_p9 = scmp.lt.u32.totalorder %s123_s14, %s261_s2 }
  0x17   :  { %p129_p10 = pnand %p127_p9, %p124_p8 }
  0x19   :  { %132 = shalt.err (!%p129_p10)
}
  0x1a   :  { %s133_s19 = scalar_lea.vmem %s33_s24, 16  ;;  %s137_s20 = scalar_lea.vmem %s33_s24, 32 }
  0x1b   :  { %p134_p11 = scmp.ne.s32.totalorder %s33_s24, %s133_s19  ;;  %p138_p12 = scmp.lt.s32.totalorder %s33_s24, %s33_s24 }
  0x1c   :  { %p139_p13 = scmp.lt.s32.totalorder %s137_s20, %s133_s19 }
  0x1e   :  { %p140_p0 = por %p139_p13, %p138_p12 }
  0x20   :  { %p141_p1 = pnand %p140_p0, %p134_p11 }
  0x22   :  { %144 = shalt.err (!%p141_p1)
}
  0x23   :  { %35 = dma.hbm_to_vmem [thread:$0]  %s261_s2, 16, %s33_s24, [#allocation6]  }
  0x24   :  { %167 = dma.done.wait [#allocation3], 16  }
  0x25   :  { %168 = vsyncadd [#allocation3], 4294967280 }
  0x26   :  { %169 = dma.done.wait [#allocation6], 16  }
  0x27   :  { %170 = vsyncadd [#allocation6], 4294967280  ;;  %v95_v0 = vld [vmem:[#allocation2] ss:$0 sm:$0xff]  ;;  %v49_v1 = vld [vmem:[%s262_s3] sm:$0x3] }
  0x28   :  { %v96_v2 = vld [vmem:[%s260_s1] ss:$0 sm:$0xff]  ;;  %v56_v3 = vmul.f32 %v95_v0, %v49_v1  ;;  %v97_v5 = vld [vmem:[#allocation5] ss:$0 sm:$0xff]  ;;  %s175_s29 = smov [#allocation7]   ;;  %vm77_vm0 = vcmask 123904  }
  0x29   :  { %v58_v4 = vld [vmem:[%s263_s4] sm:$0x3]  ;;  %s85_s30 = sshll.u32 %s175_s29, 4  ;;  %s86_s30 = int_to_ptr.vmem [resolvable:$true] %s85_s30 }
  0x2a   :  { %v68_v6 = vld [vmem:[%s264_s5] sm:$0x3]  ;;  %v65_v7 = vmul.f32 %v96_v2, %v58_v4  ;;  %s145_s1 = scalar_lea.vmem %s86_s30, 32  ;;  %p150_p3 = scmp.lt.s32.totalorder %s86_s30, %s86_s30 }
  0x2b   :  { %v75_v8 = vmul.f32 %v97_v5, %v68_v6  ;;  %p146_p2 = scmp.ne.s32.totalorder %s86_s30, %s145_s1  ;;  %p151_p4 = scmp.lt.s32.totalorder %s145_s1, %s145_s1 }
  0x2c   :  { %v66_v9 = vsub.f32 %v56_v3, %v65_v7 }
  0x2d   :  { %p152_p5 = por %p151_p4, %p150_p3 }
  0x2e   :  { %v76_v10 = vsub.f32 %v66_v9, %v75_v8 }
  0x2f   :  { %p153_p6 = pnand %p152_p5, %p146_p2 }
  0x30   :  { %78 = vst.msk [vmem:[#allocation7] sm:$0x3] %vm77_vm0, %v76_v10 }
  0x31   :  { %156 = shalt.err (!%p153_p6)
}
  0x32   :  { %s157_s5 = scalar_lea.hbm %s265_s6, 32 }
  0x33   :  { %p158_p7 = scmp.ne.s32.totalorder %s265_s6, %s157_s5  ;;  %p161_p8 = scmp.lt.u32.totalorder %s157_s5, %s265_s6 }
  0x35   :  { %p163_p9 = pnand %p161_p8, %p158_p7 }
  0x37   :  { %166 = shalt.err (!%p163_p9)
}
  0x38   :  { %88 = dma.vmem_to_hbm [thread:$0]  %s86_s30, 32, %s265_s6, [#allocation4]  }
  0x39   :  { %171 = dma.done.wait [#allocation4], 32  }
  0x3a   :  { %172 = vsyncadd [#allocation4], 4294967264 }
  0x3b   :  { %92 = vsyncpa [#allocation3], 1 }
  0x3c   :  { %93 = vsyncpa [#allocation6], 1 }
  0x3d   :  { %94 = vsyncpa [#allocation4], 1 }

</bundles_post_ra>
